<compile_context>
chip_gen: v7x
topology: tpu7x:2x2x1
jax: 0.10.0
libtpu: 0.0.40
codegen_flags: <defaults>
</compile_context>

<pallas_src>
import functools

import numpy as np
import jax
import jax.numpy as jnp
from jax.experimental import pallas as pl
from jax.experimental.pallas import tpu as pltpu


def _abcnn2_kernel(x1_ref, x2_ref, w1_ref, w2_ref, *, max_length, width,
                   match_score):
    L = max_length
    x1 = x1_ref[...]                       # (Bt, S, D) native dtype (bf16 feeds MXU directly)
    x2 = x2_ref[...]
    x1f = x1.astype(jnp.float32)
    x2f = x2.astype(jnp.float32)

    # ---- attention matrix A[b, i, j] = match(x1[b, i], x2[b, j]) ------------
    if match_score == "euclidean":
        # MXU decomposition: ||a - b||^2 = ||a||^2 + ||b||^2 - 2 a.b
        dots = jnp.einsum("bid,bjd->bij", x1, x2,
                          preferred_element_type=jnp.float32)      # (Bt, S, S)
        n1sq = jnp.sum(x1f * x1f, axis=-1)                         # (Bt, S)
        n2sq = jnp.sum(x2f * x2f, axis=-1)                         # (Bt, S)
        d2 = n1sq[:, :, None] + n2sq[:, None, :] - 2.0 * dots
        dist = jnp.sqrt(jnp.maximum(d2, 0.0))   # clamp: cancellation can go <0
        A = 1.0 / (1.0 + dist)
    elif match_score == "cosine":
        dots = jnp.einsum("bid,bjd->bij", x1, x2,
                          preferred_element_type=jnp.float32)      # (Bt, S, S)
        n1 = jnp.sqrt(jnp.sum(x1f * x1f, axis=-1))                 # (Bt, S)
        n2 = jnp.sqrt(jnp.sum(x2f * x2f, axis=-1))                 # (Bt, S)
        A = dots / (n1[:, :, None] * n2[:, None, :] + 1e-8)
    elif match_score == "manhattan":
        # L1 has no matmul decomposition; direct form (VMEM-heavy for big S, D,
        # accounted for in the batch-block sizing below).
        diff = x1f[:, :, None, :] - x2f[:, None, :, :]             # (Bt, S, S, D)
        A = 1.0 / (1.0 + jnp.sum(jnp.abs(diff), axis=-1))
    else:
        raise ValueError(f"unknown match_score: {match_score}")

    # torch `row_sum` (scales x1 rows):  a1[b, k] = sum_i A[b, i, k]
    a1 = jnp.sum(A, axis=1)                                        # (Bt, S)
    # torch `col_sum` (scales x2 rows):  a2[b, k] = sum_j A[b, k, j]
    a2 = jnp.sum(A, axis=2)                                        # (Bt, S)

    scaled1 = a1[:, :, None] * x1f                                 # (Bt, S, D)
    scaled2 = a2[:, :, None] * x2f                                 # (Bt, S, D)

    # w[b, j, :] = sum_{k=j}^{j+width-1} scaled[b, k, :]  -> `width-1` shifted adds
    w1 = scaled1[:, 0:L, :]
    w2 = scaled2[:, 0:L, :]
    for o in range(1, width):
        w1 = w1 + scaled1[:, o:o + L, :]
        w2 = w2 + scaled2[:, o:o + L, :]

    w1_ref[...] = w1.astype(w1_ref.dtype)
    w2_ref[...] = w2.astype(w2_ref.dtype)


_VMEM_LIMIT_BYTES = 32 * 1024 * 1024


def _round_up(x, m):
    return -(-x // m) * m


def _pick_batch_block(B, S, L, D, in_itemsize, match_score):
    """Largest batch block that fits under the scoped-VMEM limit, sized with
    lane/sublane padded shapes; keep >=2 grid steps so megacore can split the
    batch axis on v7x."""
    Sv = _round_up(S, 8)        # sublane-padded sequence extent of resident tiles
    Lv = _round_up(L, 8)
    Dv = _round_up(D, 128)      # lane-padded feature extent of resident tiles
    Sl = _round_up(S, 128)      # lane-padded (S,S) attention tiles
    per_b = (2 * 2 * Sv * Dv * in_itemsize   # two inputs, double-buffered
             + 2 * 2 * Lv * Dv * 4           # two f32 outputs, double-buffered
             + 4 * Sv * Dv * 4               # f32 casts + a-scaled copies
             + 6 * Sv * Sl * 4)              # dots / A / temporaries slack
    if match_score == "manhattan":
        per_b += 2 * S * Sv * Dv * 4         # (S, S, D) broadcast-difference tensor
    budget = (_VMEM_LIMIT_BYTES * 2) // 3
    bt = max(1, min(B, budget // max(per_b, 1)))
    if B >= 2 and B // bt < 2:
        bt = -(-B // 2)                      # ceil(B / 2) -> at least 2 grid steps
    return int(bt)


def abcnn2_attention(x1, x2, *, max_length, width, match_score="euclidean"):
    """x1, x2: (B, 1, S, D) with S = max_length + width - 1.
    Returns (w1, w2): (B, 1, max_length, D) float32 (matches torch.zeros dtype)."""
    B, C, S, D = x1.shape
    assert C == 1 and S == max_length + width - 1
    assert x2.shape == x1.shape
    L = max_length

    bt = _pick_batch_block(B, S, L, D, jnp.dtype(x1.dtype).itemsize, match_score)
    grid = (pl.cdiv(B, bt),)

    kernel = functools.partial(_abcnn2_kernel, max_length=L, width=width,
                               match_score=match_score)

    w1, w2 = pl.pallas_call(
        kernel,
        out_shape=(jax.ShapeDtypeStruct((B, L, D), jnp.float32),
                   jax.ShapeDtypeStruct((B, L, D), jnp.float32)),
        grid=grid,
        # channel dim squeezed by the BlockSpec; blocks cover the full (S, D)
        # extents so every DMA is a single contiguous HBM chunk.
        in_specs=[pl.BlockSpec((bt, None, S, D), lambda b: (b, 0, 0, 0)),
                  pl.BlockSpec((bt, None, S, D), lambda b: (b, 0, 0, 0))],
        out_specs=(pl.BlockSpec((bt, L, D), lambda b: (b, 0, 0)),
                   pl.BlockSpec((bt, L, D), lambda b: (b, 0, 0))),
        compiler_params=pltpu.CompilerParams(
            dimension_semantics=("parallel",),
            vmem_limit_bytes=_VMEM_LIMIT_BYTES),
    )(x1, x2)

    # Re-attach the singleton channel dim (pure reshape, no data movement).
    return w1[:, None], w2[:, None]


def _reference(x1, x2, max_length, width):
    """Pure-numpy replica of the PyTorch forward (euclidean match)."""
    x1s = np.asarray(x1[:, 0], dtype=np.float32)   # (B, S, D)
    x2s = np.asarray(x2[:, 0], dtype=np.float32)
    B, S, D = x1s.shape
    diff = x1s[:, :, None, :] - x2s[:, None, :, :]          # (B, S, S, D)
    A = 1.0 / (1.0 + np.sqrt((diff * diff).sum(-1)))        # (B, S, S)
    w1 = np.zeros((B, max_length, D), np.float32)
    w2 = np.zeros((B, max_length, D), np.float32)
    for j in range(max_length):
        for k in range(j, j + width):
            row_sum = A[:, :, k].sum(axis=1)[:, None]        # sum_i A[i, k]
            col_sum = A[:, k, :].sum(axis=1)[:, None]        # sum_j A[k, j]
            w1[:, j, :] += row_sum * x1s[:, k, :]
            w2[:, j, :] += col_sum * x2s[:, k, :]
    return w1[:, None], w2[:, None]


if __name__ == "__main__":
    batch_size = 2
    max_length = 8
    width = 3
    output_size = 32
    seq = max_length + width - 1   # 10

    key = jax.random.PRNGKey(0)
    k1, k2 = jax.random.split(key)
    x1 = jax.random.normal(k1, (batch_size, 1, seq, output_size), jnp.float32)
    x2 = jax.random.normal(k2, (batch_size, 1, seq, output_size), jnp.float32)

    w1, w2 = abcnn2_attention(x1, x2, max_length=max_length, width=width,
                              match_score="euclidean")
    jax.block_until_ready((w1, w2))

    assert w1.shape == (batch_size, 1, max_length, output_size)
    assert w2.shape == (batch_size, 1, max_length, output_size)

    r1, r2 = _reference(x1, x2, max_length, width)
    np.testing.assert_allclose(np.asarray(w1), r1, rtol=1e-4, atol=1e-4)
    np.testing.assert_allclose(np.asarray(w2), r2, rtol=1e-4, atol=1e-4)

    print("KERNEL_OK")
</pallas_src>

<mosaic_0001>
module attributes {stable_mosaic.version = 11 : i64} {
  func.func @_abcnn2_kernel(%arg0: i32, %arg1: memref<1x1x10x32xf32, #tpu.memory_space<vmem>>, %arg2: memref<1x1x10x32xf32, #tpu.memory_space<vmem>>, %arg3: memref<1x8x32xf32, #tpu.memory_space<vmem>>, %arg4: memref<1x8x32xf32, #tpu.memory_space<vmem>>) attributes {dimension_semantics = [#tpu.dimension_semantics<parallel>], iteration_bounds = array<i64: 2>, scalar_prefetch = 0 : i64, scratch_operands = 0 : i64, tpu.core_type = #tpu.core_type<tc>, window_params = [{transform_indices = @transform_0, window_bounds = array<i64: 1, 1, 10, 32>}, {transform_indices = @transform_1, window_bounds = array<i64: 1, 1, 10, 32>}, {transform_indices = @transform_2, window_bounds = array<i64: 1, 8, 32>}, {transform_indices = @transform_3, window_bounds = array<i64: 1, 8, 32>}]} {
    %c0 = arith.constant 0 : index
    %c0_0 = arith.constant 0 : index
    %c0_1 = arith.constant 0 : index
    %c0_2 = arith.constant 0 : index
    %0 = vector.load %arg1[%c0, %c0_0, %c0_1, %c0_2] : memref<1x1x10x32xf32, #tpu.memory_space<vmem>>, vector<1x1x10x32xf32>
    %1 = vector.shape_cast %0 : vector<1x1x10x32xf32> to vector<1x10x32xf32>
    %c0_3 = arith.constant 0 : index
    %c0_4 = arith.constant 0 : index
    %c0_5 = arith.constant 0 : index
    %c0_6 = arith.constant 0 : index
    %2 = vector.load %arg2[%c0_3, %c0_4, %c0_5, %c0_6] : memref<1x1x10x32xf32, #tpu.memory_space<vmem>>, vector<1x1x10x32xf32>
    %3 = vector.shape_cast %2 : vector<1x1x10x32xf32> to vector<1x10x32xf32>
    "tpu.trace_start"() <{level = 10 : i32, message = "bid,bjd->bij"}> : () -> ()
    %cst = arith.constant dense<0.000000e+00> : vector<1x10x10xf32>
    %4 = tpu.matmul %1, %3, %cst {dimension_numbers = #tpu.dot_dimension_numbers<[2], [2], [1], [1], [0, 0, 0, 1, 1, 1], [0], [0]>} : vector<1x10x32xf32>, vector<1x10x32xf32>, vector<1x10x10xf32> -> vector<1x10x10xf32>
    "tpu.trace_stop"() : () -> ()
    %5 = arith.mulf %1, %1 : vector<1x10x32xf32>
    %cst_7 = arith.constant dense<0.000000e+00> : vector<1x10xf32>
    %6 = vector.multi_reduction <add>, %5, %cst_7 [2] : vector<1x10x32xf32> to vector<1x10xf32>
    %7 = arith.mulf %3, %3 : vector<1x10x32xf32>
    %cst_8 = arith.constant dense<0.000000e+00> : vector<1x10xf32>
    %8 = vector.multi_reduction <add>, %7, %cst_8 [2] : vector<1x10x32xf32> to vector<1x10xf32>
    %9 = vector.shape_cast %6 : vector<1x10xf32> to vector<1x10x1xf32>
    %10 = vector.shape_cast %8 : vector<1x10xf32> to vector<1x1x10xf32>
    %11 = vector.broadcast %9 : vector<1x10x1xf32> to vector<1x10x10xf32>
    %12 = vector.broadcast %10 : vector<1x1x10xf32> to vector<1x10x10xf32>
    %13 = arith.addf %11, %12 : vector<1x10x10xf32>
    %cst_9 = arith.constant 2.000000e+00 : f32
    %14 = vector.broadcast %cst_9 : f32 to vector<1x10x10xf32>
    %15 = arith.mulf %14, %4 : vector<1x10x10xf32>
    %16 = arith.subf %13, %15 : vector<1x10x10xf32>
    %cst_10 = arith.constant 0.000000e+00 : f32
    %17 = vector.broadcast %cst_10 : f32 to vector<1x10x10xf32>
    %18 = arith.maximumf %16, %17 : vector<1x10x10xf32>
    %19 = math.sqrt %18 : vector<1x10x10xf32>
    %cst_11 = arith.constant 1.000000e+00 : f32
    %20 = vector.broadcast %cst_11 : f32 to vector<1x10x10xf32>
    %21 = arith.addf %20, %19 : vector<1x10x10xf32>
    %cst_12 = arith.constant 1.000000e+00 : f32
    %22 = vector.broadcast %cst_12 : f32 to vector<1x10x10xf32>
    %23 = arith.divf %22, %21 : vector<1x10x10xf32>
    %cst_13 = arith.constant dense<0.000000e+00> : vector<1x10xf32>
    %24 = vector.multi_reduction <add>, %23, %cst_13 [1] : vector<1x10x10xf32> to vector<1x10xf32>
    %cst_14 = arith.constant dense<0.000000e+00> : vector<1x10xf32>
    %25 = vector.multi_reduction <add>, %23, %cst_14 [2] : vector<1x10x10xf32> to vector<1x10xf32>
    %26 = vector.shape_cast %24 : vector<1x10xf32> to vector<1x10x1xf32>
    %27 = vector.broadcast %26 : vector<1x10x1xf32> to vector<1x10x32xf32>
    %28 = arith.mulf %27, %1 : vector<1x10x32xf32>
    %29 = vector.shape_cast %25 : vector<1x10xf32> to vector<1x10x1xf32>
    %30 = vector.broadcast %29 : vector<1x10x1xf32> to vector<1x10x32xf32>
    %31 = arith.mulf %30, %3 : vector<1x10x32xf32>
    %32 = vector.extract_strided_slice %28 {offsets = [0, 0, 0], sizes = [1, 8, 32], strides = [1, 1, 1]} : vector<1x10x32xf32> to vector<1x8x32xf32>
    %33 = vector.extract_strided_slice %31 {offsets = [0, 0, 0], sizes = [1, 8, 32], strides = [1, 1, 1]} : vector<1x10x32xf32> to vector<1x8x32xf32>
    %34 = vector.extract_strided_slice %28 {offsets = [0, 1, 0], sizes = [1, 8, 32], strides = [1, 1, 1]} : vector<1x10x32xf32> to vector<1x8x32xf32>
    %35 = arith.addf %32, %34 : vector<1x8x32xf32>
    %36 = vector.extract_strided_slice %31 {offsets = [0, 1, 0], sizes = [1, 8, 32], strides = [1, 1, 1]} : vector<1x10x32xf32> to vector<1x8x32xf32>
    %37 = arith.addf %33, %36 : vector<1x8x32xf32>
    %38 = vector.extract_strided_slice %28 {offsets = [0, 2, 0], sizes = [1, 8, 32], strides = [1, 1, 1]} : vector<1x10x32xf32> to vector<1x8x32xf32>
    %39 = arith.addf %35, %38 : vector<1x8x32xf32>
    %40 = vector.extract_strided_slice %31 {offsets = [0, 2, 0], sizes = [1, 8, 32], strides = [1, 1, 1]} : vector<1x10x32xf32> to vector<1x8x32xf32>
    %41 = arith.addf %37, %40 : vector<1x8x32xf32>
    %c0_15 = arith.constant 0 : index
    %c0_16 = arith.constant 0 : index
    %c0_17 = arith.constant 0 : index
    %42 = vector.load %arg3[%c0_15, %c0_16, %c0_17] : memref<1x8x32xf32, #tpu.memory_space<vmem>>, vector<1x8x32xf32>
    tpu.vector_store %arg3[%c0_15, %c0_16, %c0_17], %39 {strides = array<i32>} : memref<1x8x32xf32, #tpu.memory_space<vmem>>, vector<1x8x32xf32>,
    %c0_18 = arith.constant 0 : index
    %c0_19 = arith.constant 0 : index
    %c0_20 = arith.constant 0 : index
    %43 = vector.load %arg4[%c0_18, %c0_19, %c0_20] : memref<1x8x32xf32, #tpu.memory_space<vmem>>, vector<1x8x32xf32>
    tpu.vector_store %arg4[%c0_18, %c0_19, %c0_20], %41 {strides = array<i32>} : memref<1x8x32xf32, #tpu.memory_space<vmem>>, vector<1x8x32xf32>,
    return
  }
  func.func @transform_0(%arg0: i32) -> (i32, i32, i32, i32) {
    %c0_i32 = arith.constant 0 : i32
    %c0_i32_0 = arith.constant 0 : i32
    %c0_i32_1 = arith.constant 0 : i32
    %c0_i32_2 = arith.constant 0 : i32
    return %arg0, %c0_i32, %c0_i32_0, %c0_i32_1 : i32, i32, i32, i32
  }
  func.func @transform_1(%arg0: i32) -> (i32, i32, i32, i32) {
    %c0_i32 = arith.constant 0 : i32
    %c0_i32_0 = arith.constant 0 : i32
    %c0_i32_1 = arith.constant 0 : i32
    %c0_i32_2 = arith.constant 0 : i32
    return %arg0, %c0_i32, %c0_i32_0, %c0_i32_1 : i32, i32, i32, i32
  }
  func.func @transform_2(%arg0: i32) -> (i32, i32, i32) {
    %c0_i32 = arith.constant 0 : i32
    %c0_i32_0 = arith.constant 0 : i32
    %c0_i32_1 = arith.constant 0 : i32
    return %arg0, %c0_i32, %c0_i32_0 : i32, i32, i32
  }
  func.func @transform_3(%arg0: i32) -> (i32, i32, i32) {
    %c0_i32 = arith.constant 0 : i32
    %c0_i32_0 = arith.constant 0 : i32
    %c0_i32_1 = arith.constant 0 : i32
    return %arg0, %c0_i32, %c0_i32_0 : i32, i32, i32
  }
}

</mosaic_0001>

<bundles_post_ra>
// kernel: tpu_custom_call.1
= control target key start
LH: loop header
LB: loop body
LE: loop exit
PB: predicated region body
PF: predicated region fallthrough
CT: control target
= control target key end

     0   :  { %9 = vsyncpa [#allocation3], 0  ;;  %s954_s0 = inlined_call_operand.vmem [shape: f32[2,1,10,32], index: 0, kind: input, shape index: {}]   ;;  %s955_s1 = inlined_call_operand.vmem [shape: f32[2,1,10,32], index: 1, kind: input, shape index: {}]   ;;  %s956_s2 = inlined_call_operand.hbm [shape: f32[2,8,32], index: 2, kind: output, shape index: {0}]   ;;  %s957_s3 = inlined_call_operand.hbm [shape: f32[2,8,32], index: 3, kind: output, shape index: {1}]  }
   0x1   :  { %11 = vsyncpa [#allocation3 + $0x1], 0 }
   0x2   :  { %12 = vsyncpa [#allocation5], 0 }
   0x3   :  { %14 = vsyncpa [#allocation5 + $0x1], 0  ;;  %s764_s12 = smov 0   ;;  %s766_s13 = smov 0  }
   0x4   :  { %s768_s14 = smov 0   ;;  %s770_s15 = smov 0  }
   0x5 LB: > { %s785_s16 = sadd.s32 4294967295, %s740_s15   ;;  %s555_s17 = sadd.s32 4294967294, %s740_s15   ;;  %s740_s15 = sphi %s770_s15, %s965_s15   ;;  %s736_s14 = sphi %s768_s14, %s964_s14   ;;  %s732_s13 = sphi %s766_s13, %s963_s13   ;;  %s728_s12 = sphi %s764_s12, %s962_s12  }
   0x6   : > { %s789_s18 = sadd.s32 1, %s740_s15   ;;  %s79_s19 = sadd.s32 1, %s736_s14 }
   0x7   : > { %s76_s20 = ssub.s32 %s740_s15, %s789_s18  ;;  %p89_p0 = scmp.ne.s32.totalorder %s736_s14, %s732_s13 }
   0x8   : > { %p77_p1 = scmp.eq.s32.totalorder %s76_s20, 0  ;;  %p90_p2 = scmp.eq.s32.totalorder %s785_s16, 1 }
   0x9   : > { %p95_p3 = scmp.ne.s32.totalorder %s732_s13, %s728_s12  ;;  %p96_p4 = scmp.eq.s32.totalorder %s555_s17, 1 }
   0xa   : > { %s800_s21 = scalar_select %p77_p1, %s736_s14, %s79_s19  }
   0xb   : > { %p802_p5 = por %p90_p2, %p89_p0  ;;  %p806_p6 = por %p96_p4, %p95_p3 }
   0xc   : > { %p558_p7 = scmp.ge.s32.totalorder %s740_s15, 1  ;;  %p156_p8 = scmp.lt.s32.totalorder %s740_s15, 3 }
   0xe   : > { %p157_p9 = pnand %p558_p7, %p156_p8 }
   0xf   : > { %p190_p10 = scmp.lt.s32.totalorder (!%p157_p9), %s785_s16, 1  ;;  %vm204_vm0 = vcmask (!%p157_p9), 261120   ;;  %vm297_vm2 = vcmask (!%p157_p9), 254976   ;;  %v311_v14 = vlaneseq (!%p157_p9)  ;;  %vm322_vm3 = vcmask (!%p157_p9), 130112   ;;  %s855_s5 = sand.u32 (!%p157_p9), 1, %s732_s13  }
  0x10   : > { %160 = sbr.rel (%p157_p9) target bundleno = 474 (0x1da), region = 28  ;;  %vm819_vm1 = vmpackc.low (!%p157_p9), %vm204_vm0, %vm204_vm0  ;;  %vm368_vm8 = vcmask (!%p157_p9), 74752   ;;  %vm366_vm9 = vcmask (!%p157_p9), 80896   ;;  %s559_s6 = sshll.u32 (!%p157_p9), %s855_s5, 3  ;;  %vm394_vm10 = vcmask (!%p157_p9), 1046528   ;;  %vm407_vm11 = vcmask (!%p157_p9), 1045504  }
  0x11   : > { %v312_v15 = vand.u32 (!%p157_p9), 127, %v311_v14  ;;  %v314_v17 = vshrl.u32 (!%p157_p9), %v311_v14, 7  ;;  %s571_s7 = sshll.u32 (!%p157_p9), %s785_s16, 7  ;;  %s189_s8 = scalar_lea.vmem (!%p157_p9), [#allocation4], %s559_s6 }
  0x12   : > { %s452_s9 = sshll.u32 (!%p157_p9), %s189_s8, 4  ;;  %s870_s17 = scalar_lea.hbm (!%p157_p9), %s957_s3, %s571_s7  ;;  %s872_s9 = int_to_ptr.vmem [resolvable:$true] %s452_s9 }
  0x13   : > { %v317_v18 = vadd.s32 (!%p157_p9), 4294967288, %v312_v15  ;;  %v315_v19 = vsub.s32 (!%p157_p9), %v312_v15, %v314_v17  ;;  %s875_s19 = scalar_lea.vmem (!%p157_p9), [#allocation2], %s559_s6  ;;  %s742_s26 = smov (!%p157_p9), [#allocation4]  }
  0x14   : > { %s439_s20 = sshll.u32 (!%p157_p9), %s875_s19, 4  ;;  %s650_s27 = sshll.u32 (!%p157_p9), %s742_s26, 4  ;;  %s651_s27 = int_to_ptr.vmem [resolvable:$false] %s650_s27  ;;  %s911_s20 = int_to_ptr.vmem [resolvable:$true] %s439_s20 }
  0x15   : > { %v320_v20 = vsub.s32 (!%p157_p9), %v317_v18, %v314_v17  ;;  %p653_p0 = scmp.lt.s32.totalorder (!%p157_p9), %s872_s9, %s651_s27 }
  0x17   : > { %s191_s24 = scalar_select %p190_p10, %s785_s16, 1 }
  0x19   : > { %s575_s25 = sshll.u32 %s191_s24, 4  ;;  %s426_s24 = scalar_lea.sflag [#allocation5], %s855_s5 }
  0x1a   : > { %s199_s28 = scalar_lea.vmem %s955_s1, %s575_s25  ;;  %s194_s4 = scalar_lea.vmem %s954_s0, %s575_s25 }
  0x1b   : > { %v826_v1 = vld [vmem:[%s199_s28] sm:$0xff]  ;;  %v828_v2 = vld [vmem:[%s199_s28 + $0x8] sm:$0x3]  ;;  %s646_s25 = scalar_lea.vmem %s872_s9, 128  ;;  %s652_s28 = scalar_lea.vmem %s651_s27, 256 }
  0x1c   : > { %v830_v3 = vld [vmem:[%s194_s4] sm:$0xff]  ;;  %v588_v4 = vpack.c.bf16 %v828_v2, %v826_v1  ;;  %v836_v5 = vld [vmem:[%s194_s4 + $0x8] sm:$0x3]  ;;  %v301_v6 = vmul.f32 %v826_v1, %v826_v1  ;;  %v302_v8 = vmul.f32 %v828_v2, %v828_v2  ;;  %p647_p11 = scmp.ne.s32.totalorder %s872_s9, %s646_s25  ;;  %p654_p1 = scmp.lt.s32.totalorder %s652_s28, %s646_s25 }
  0x1d   : > { %585 = vmatprep.mubr.msk.f32.mxu0 %vm204_vm0, %v830_v3  ;;  %v292_v7 = vmul.f32 %v830_v3, %v830_v3  ;;  %v293_v9 = vmul.f32 %v836_v5, %v836_v5 }
  0x1e   : > { %590 = vmatprep.subr.msk.bf16.mxu0 %vm819_vm1, %v588_v4  ;;  %v303_v10 = vsel %vm204_vm0, %v301_v6, 0.0  ;;  %v306_v12 = vsel %vm297_vm2, %v302_v8, 0.0  ;;  %p648_p12 = pnand %p647_p11, %p802_p5  ;;  %p655_p2 = por %p654_p1, %p653_p0 }
  0x1f   : > { %v294_v11 = vsel %vm204_vm0, %v292_v7, 0.0  ;;  %593 = vmatpush3.bf16.xpose.msk.msra.mxu0 %vm819_vm1, %v588_v4  ;;  %304 = vadd.xlane.f32.xlu0 %v303_v10  ;;  %v298_v13 = vsel %vm297_vm2, %v293_v9, 0.0 }
  0x20   : > { %295 = vadd.xlane.f32.xlu1 %v294_v11  ;;  %p649_p13 = pneg %p648_p12 }
  0x22   : > { %p656_p3 = pnand %p655_p2, %p649_p13 }
  0x23   : > { %307 = vadd.xlane.f32.xlu0 %v306_v12 }
  0x24   : > { %299 = vadd.xlane.f32.xlu1 %v298_v13 }
  0x26   : > { %586 = vmatmul.mubr.msk.f32.vlgmr.msra.gmra.mrb[0].mxu0 %vm204_vm0, %v836_v5 }
  0xac   : > { %v305_v16 = vpop.xlane.xlu0 %304 }
  0xad   : > { %v296_v22 = vpop.xlane.xlu1 %295  ;;  %v316_v23 = vrot.slane %v305_v16, %v315_v19 }
  0xb0   : > { %v308_v21 = vpop.xlane.xlu0 %307 }
  0xb1   : > { %v321_v24 = vrot.slane %v308_v21, %v320_v20  ;;  %v300_v26 = vpop.xlane.xlu1 %299 }
  0xb3   : > { %v323_v25 = vsel %vm322_vm3, %v321_v24, %v316_v23 }
  0xb4   : > { %v339_v28 = vadd.f32 %v323_v25, %v300_v26  ;;  %v338_v31 = vadd.f32 %v323_v25, %v296_v22 }
  0xf9   : > { %v587_v27 = vpop.f32.mrb[0].mxu0 }
  0xfa   : > { %v341_v29 = vmul.f32 2.0, %v587_v27  ;;  %v283_v30 = vpop.f32.mrb[1].mxu0 }
  0xfb   : > { %v340_v32 = vmul.f32 2.0, %v283_v30 }
  0xfc   : > { %v343_v33 = vsub.f32 %v339_v28, %v341_v29 }
  0xfd   : > { %v342_v34 = vsub.f32 %v338_v31, %v340_v32 }
  0xfe   : > { %v345_v35 = vmax.f32 %v343_v33, 0.0 }
  0xff   : > { %v344_v36 = vmax.f32 %v342_v34, 0.0 }
 0x100   : > { %638 = vrsqrt.f32 %v345_v35  ;;  %vm355_vm4 = vcmp.eq.f32.partialorder %v345_v35, inf  ;;  %v358_v40 = vand.u32 2147483648, %v345_v35  ;;  %vm357_vm5 = vcmp.eq.f32.partialorder %v345_v35, 0.0 }
 0x101   : > { %640 = vrsqrt.f32 %v344_v36  ;;  %vm348_vm6 = vcmp.eq.f32.partialorder %v344_v36, inf  ;;  %v351_v43 = vand.u32 2147483648, %v344_v36  ;;  %vm350_vm7 = vcmp.eq.f32.partialorder %v344_v36, 0.0 }
 0x10a   : > { %v639_v37 = vpop.eup %638 }
 0x10b   : > { %v641_v38 = vpop.eup %640  ;;  %v354_v39 = vmul.f32 %v639_v37, %v345_v35 }
 0x10c   : > { %v347_v41 = vmul.f32 %v641_v38, %v344_v36 }
 0x10d   : > { %v356_v42 = vsel %vm355_vm4, %v345_v35, %v354_v39 }
 0x10e   : > { %v359_v44 = vsel %vm357_vm5, %v358_v40, %v356_v42  ;;  %v349_v45 = vsel %vm348_vm6, %v344_v36, %v347_v41 }
 0x10f   : > { %v361_v46 = vadd.f32 1.0, %v359_v44  ;;  %v352_v47 = vsel %vm350_vm7, %v351_v43, %v349_v45 }
 0x110   : > { %v360_v48 = vadd.f32 1.0, %v352_v47 }
 0x111   : > { %642 = vrcp.f32 %v361_v46 }
 0x112   : > { %644 = vrcp.f32 %v360_v48 }
 0x11b   : > { %v643_v49 = vpop.eup %642 }
 0x11c   : > { %v645_v50 = vpop.eup %644  ;;  %v369_v51 = vsel %vm368_vm8, %v643_v49, 0.0 }
 0x11d   : > { %379 = vadd.xlane.f32.xlu1 %v369_v51  ;;  %v367_v52 = vsel %vm366_vm9, %v645_v50, 0.0 }
 0x11e   : > { %377 = vadd.xlane.f32.xlu0 %v367_v52  ;;  %v370_v53 = vadd.f32 %v369_v51, %v367_v52 }
 0x120   : > { %v371_v54 = vrot.slane %v370_v53, 4 }
 0x122   : > { %v372_v55 = vadd.f32 %v371_v54, %v370_v53 }
 0x124   : > { %v373_v56 = vrot.slane %v372_v55, 2 }
 0x126   : > { %v374_v57 = vadd.f32 %v373_v56, %v372_v55 }
 0x128   : > { %v375_v58 = vrot.slane %v374_v57, 1 }
 0x12a   : > { %v376_v59 = vadd.f32 %v375_v58, %v374_v57 }
 0x12e   : > { %386 = vbcast.lane.b32.xlu1 %v376_v59, 264 }
 0x134   : > { %382 = vbcast.lane.b32.xlu0 %v376_v59, 256 }
 0x1aa   : > { %v380_v60 = vpop.xlane.xlu1 %379 }
 0x1ab   : > { %v391_v61 = vmul.f32 %v380_v60, %v828_v2  ;;  %v378_v62 = vpop.xlane.xlu0 %377 }
 0x1ac   : > { %v390_v63 = vmul.f32 %v378_v62, %v826_v1 }
 0x1ad   : > { %v403_v0 = vrot.slane %v391_v61, 1  ;;  %v414_v4 = vrot.slane %v391_v61, 2 }
 0x1ae   : > { %v402_v6 = vrot.slane %v390_v63, 1  ;;  %v413_v7 = vrot.slane %v390_v63, 2  ;;  %v387_v8 = vpop.permute.xlu1 %386 }
 0x1af   : > { %v389_v9 = vmul.f32 %v387_v8, %v836_v5  ;;  %v383_v10 = vpop.permute.xlu0 %382 }
 0x1b0   : > { %v404_v11 = vsel %vm394_vm10, %v402_v6, %v403_v0  ;;  %v388_v12 = vmul.f32 %v383_v10, %v830_v3  ;;  %v415_v13 = vsel %vm407_vm11, %v413_v7, %v414_v4 }
 0x1b1   : > { %v406_v1 = vadd.f32 %v404_v11, %v390_v63  ;;  %v396_v2 = vrot.slane %v389_v9, 1  ;;  %v409_v14 = vrot.slane %v389_v9, 2 }
 0x1b2   : > { %v395_v15 = vrot.slane %v388_v12, 1  ;;  %v408_v16 = vrot.slane %v388_v12, 2 }
 0x1b3   : > { %v417_v17 = vadd.f32 %v415_v13, %v406_v1 }
 0x1b4   : > { %v397_v3 = vsel %vm394_vm10, %v395_v15, %v396_v2  ;;  %v410_v18 = vsel %vm407_vm11, %v408_v16, %v409_v14 }
 0x1b5   : > { %v399_v5 = vadd.f32 %v397_v3, %v388_v12  ;;  %419 = vst.msk [vmem:[%s189_s8] sm:$0xff] %vm204_vm0, %v417_v17 }
 0x1b6   : > { %659 = shalt.err (!%p656_p3)
}
 0x1b7   : > { %s660_s29 = scalar_lea.hbm %s870_s17, 128  ;;  %s664_s6 = scalar_lea.hbm %s957_s3, 256 }
 0x1b8   : > { %p661_p4 = scmp.ne.s32.totalorder %s870_s17, %s660_s29  ;;  %p665_p9 = scmp.lt.u32.totalorder %s870_s17, %s957_s3 }
 0x1b9   : > { %p666_p10 = scmp.lt.u32.totalorder %s664_s6, %s660_s29  ;;  %p668_p12 = scmp.lt.u32.totalorder %s660_s29, %s870_s17 }
 0x1ba   : > { %p662_p7 = pnand %p661_p4, %p802_p5 }
 0x1bb   : > { %p667_p11 = por %p666_p10, %p665_p9 }
 0x1bc   : > { %p663_p8 = pneg %p662_p7 }
 0x1bd   : > { %p669_p13 = por %p668_p12, %p667_p11 }
 0x1bf   : > { %p670_p0 = pnand %p669_p13, %p663_p8 }
 0x1c1   : > { %673 = shalt.err (!%p670_p0)
}
 0x1c2   : > { %595 = dma.vmem_to_hbm [thread:$0]  (%p802_p5), %s872_s9, 128, %s870_s17, %s426_s24   ;;  %v412_v19 = vadd.f32 %v410_v18, %v399_v5 }
 0x1c3   : > { %s907_s26 = scalar_lea.hbm %s956_s2, %s571_s7  ;;  %s421_s27 = scalar_lea.sflag [#allocation3], %s855_s5 }
 0x1c4   : > { %418 = vst.msk [vmem:[%s875_s19] sm:$0xff] %vm204_vm0, %v412_v19  ;;  %s674_s28 = scalar_lea.vmem %s911_s20, 128  ;;  %s743_s16 = smov [#allocation2]  }
 0x1c5   : > { %p675_p1 = scmp.ne.s32.totalorder %s911_s20, %s674_s28  ;;  %s678_s9 = sshll.u32 %s743_s16, 4  ;;  %s679_s9 = int_to_ptr.vmem [resolvable:$false] %s678_s9 }
 0x1c6   : > { %s680_s17 = scalar_lea.vmem %s679_s9, 256  ;;  %p681_p4 = scmp.lt.s32.totalorder %s911_s20, %s679_s9 }
 0x1c7   : > { %p676_p2 = pnand %p675_p1, %p802_p5  ;;  %p682_p7 = scmp.lt.s32.totalorder %s680_s17, %s674_s28 }
 0x1c9   : > { %p677_p3 = pneg %p676_p2  ;;  %p683_p8 = por %p682_p7, %p681_p4 }
 0x1cb   : > { %p684_p9 = pnand %p683_p8, %p677_p3 }
 0x1cd   : > { %687 = shalt.err (!%p684_p9)
}
 0x1ce   : > { %s688_s5 = scalar_lea.hbm %s907_s26, 128  ;;  %s692_s24 = scalar_lea.hbm %s956_s2, 256 }
 0x1cf   : > { %p689_p10 = scmp.ne.s32.totalorder %s907_s26, %s688_s5  ;;  %p693_p13 = scmp.lt.u32.totalorder %s907_s26, %s956_s2 }
 0x1d0   : > { %p694_p0 = scmp.lt.u32.totalorder %s692_s24, %s688_s5  ;;  %p696_p2 = scmp.lt.u32.totalorder %s688_s5, %s907_s26 }
 0x1d1   : > { %p690_p11 = pnand %p689_p10, %p802_p5 }
 0x1d2   : > { %p695_p1 = por %p694_p0, %p693_p13 }
 0x1d3   : > { %p691_p12 = pneg %p690_p11 }
 0x1d4   : > { %p697_p3 = por %p696_p2, %p695_p1 }
 0x1d6   : > { %p698_p4 = pnand %p697_p3, %p691_p12 }
 0x1d8   : > { %701 = shalt.err (!%p698_p4)
}
 0x1d9   : > { %594 = dma.vmem_to_hbm [thread:$0]  (%p802_p5), %s911_s20, 128, %s907_s26, %s421_s27  }
 0x1da PF: > { %p605_p7 = scmp.ge.s32.totalorder %s740_s15, 2  ;;  %s464_s4 = sand.u32 1, %s728_s12  }
 0x1db   : > { %s465_s6 = scalar_lea.sflag [#allocation3], %s464_s4 }
 0x1dc   : > { %p599_p8 = pnand %p605_p7, %p806_p6 }
 0x1de   : > { %719 = dma.done.wait (!%p599_p8), %s465_s6, 128  }
 0x1df   : > { %721 = vsyncadd (!%p599_p8), %s465_s6, 4294967168  ;;  %s474_s8 = scalar_lea.sflag [#allocation5], %s464_s4 }
 0x1e0   : > { %723 = dma.done.wait (!%p599_p8), %s474_s8, 128  }
 0x1e1   : > { %725 = vsyncadd (!%p599_p8), %s474_s8, 4294967168  ;;  %p17_p5 = scmp.ge.s32.totalorder %s789_s18, 4   ;;  %s962_s12 = smov %s732_s13 }
 0x1e2   : > { %s963_s13 = smov %s736_s14  ;;  %s964_s14 = smov %s800_s21 }
 0x1e3   : > { %s965_s15 = smov %s789_s18  ;;  %19 = sbr.rel (!%p17_p5) target bundleno = 5 (0x5), region = 83 }
 0x1ea   :  { %479 = vsyncpa [#allocation3], 1 }
 0x1eb   :  { %481 = vsyncpa [#allocation3 + $0x1], 1 }
 0x1ec   :  { %482 = vsyncpa [#allocation5], 1 }
 0x1ed   :  { %484 = vsyncpa [#allocation5 + $0x1], 1 }

</bundles_post_ra>
